<compile_context>
chip_gen: v6e
topology: v6e:2x2x1
jax: 0.10.0
libtpu: 0.0.40
codegen_flags: <defaults>
</compile_context>

<pallas_src>
import functools

import jax
import jax.numpy as jnp
from jax.experimental import pallas as pl
from jax.experimental.pallas import tpu as pltpu


def _round_up(x, m):
    return ((x + m - 1) // m) * m


def _mlp_base_kernel(x_ref, w_ref, b_ref, value_ref, actor_ref, *, n_in_p, hidden):
    """Fused actor+critic 3-layer MLP + critic_linear.

    w_ref: [n_in_p + 4H, 2H] bf16 slab  (W1_fused ; W2_blockdiag ; W3_blockdiag)
    b_ref: [8, 2H] f32 slab   row0..2 = fused biases, row3 = [0 | clw], row4[0] = clb
    """
    H = hidden
    H2 = 2 * H

    x = x_ref[...].astype(jnp.bfloat16)

    # Layer 1 (fused actor|critic): [B, n_in_p] @ [n_in_p, 2H]
    h = jnp.dot(x, w_ref[0:n_in_p, :], preferred_element_type=jnp.float32)
    h = jnp.tanh(h + b_ref[0:1, :])

    # Layer 2 (block-diagonal): [B, 2H] @ [2H, 2H]
    h = jnp.dot(h.astype(jnp.bfloat16), w_ref[n_in_p:n_in_p + H2, :],
                preferred_element_type=jnp.float32)
    h = jnp.tanh(h + b_ref[1:2, :])

    # Layer 3 (block-diagonal): [B, 2H] @ [2H, 2H]
    h = jnp.dot(h.astype(jnp.bfloat16), w_ref[n_in_p + H2:n_in_p + 2 * H2, :],
                preferred_element_type=jnp.float32)
    h = jnp.tanh(h + b_ref[2:3, :])

    # critic_linear as a VPU mul + XLU lane reduce.  Bias-slab row 3 holds clw
    # in the critic columns (H:2H) and zeros in the actor columns, so the
    # actor half drops out of the sum automatically.
    v = jnp.sum(h * b_ref[3:4, :], axis=-1, keepdims=True) + b_ref[4:5, 0:1]

    value_ref[...] = v.astype(value_ref.dtype)
    actor_ref[...] = h[:, 0:H].astype(actor_ref.dtype)


def pack_mlp_base_params(params, num_inputs, hidden_size):
    """Pack per-layer PyTorch-layout params into (weight slab bf16, bias slab f32)."""
    H = hidden_size
    H2 = 2 * H
    n_in_p = _round_up(num_inputs, 16)  # bf16 sublane tile = 16 rows

    w1 = jnp.zeros((n_in_p, H2), jnp.float32)
    w1 = w1.at[:num_inputs, :H].set(params["aw1"])
    w1 = w1.at[:num_inputs, H:].set(params["cw1"])

    w2 = jnp.zeros((H2, H2), jnp.float32)
    w2 = w2.at[:H, :H].set(params["aw2"])
    w2 = w2.at[H:, H:].set(params["cw2"])

    w3 = jnp.zeros((H2, H2), jnp.float32)
    w3 = w3.at[:H, :H].set(params["aw3"])
    w3 = w3.at[H:, H:].set(params["cw3"])

    wslab = jnp.concatenate([w1, w2, w3], axis=0).astype(jnp.bfloat16)

    bslab = jnp.zeros((8, H2), jnp.float32)
    bslab = bslab.at[0, :H].set(params["ab1"][0]).at[0, H:].set(params["cb1"][0])
    bslab = bslab.at[1, :H].set(params["ab2"][0]).at[1, H:].set(params["cb2"][0])
    bslab = bslab.at[2, :H].set(params["ab3"][0]).at[2, H:].set(params["cb3"][0])
    bslab = bslab.at[3, H:].set(params["clw"][:, 0])   # critic_linear weight
    bslab = bslab.at[4, 0].set(params["clb"][0, 0])    # critic_linear bias
    return wslab, bslab


def mlp_base_forward(inputs, rnn_hxs, masks, wslab, bslab, *, hidden_size):
    """Pallas implementation of MLPBase.forward (non-recurrent).

    Returns (value [B,1], hidden_actor [B,H], rnn_hxs passthrough).
    `masks` is unused when the base is non-recurrent (matches PyTorch).
    """
    del masks  # unused in the non-recurrent path
    B, n_in = inputs.shape
    H = hidden_size
    H2 = 2 * H
    n_in_p = wslab.shape[0] - 2 * H2

    x = inputs
    if n_in_p != n_in:
        x = jnp.pad(inputs, ((0, 0), (0, n_in_p - n_in)))

    TILE_B = 512  # sized against v7x's 64 MiB VMEM; params stay resident
    if B <= TILE_B:
        tile_b = B
        grid = (1,)
    else:
        tile_b = TILE_B
        grid = (pl.cdiv(B, TILE_B),)

    kernel = functools.partial(_mlp_base_kernel, n_in_p=n_in_p, hidden=H)

    flops = 2 * B * (n_in_p * H2 + 2 * H2 * H2 + H2)
    bytes_accessed = (x.size * x.dtype.itemsize
                      + wslab.size * 2 + bslab.size * 4
                      + B * (1 + H) * inputs.dtype.itemsize)
    cost = pl.CostEstimate(flops=flops,
                           transcendentals=3 * B * H2,
                           bytes_accessed=bytes_accessed)

    value, hidden_actor = pl.pallas_call(
        kernel,
        out_shape=(
            jax.ShapeDtypeStruct((B, 1), inputs.dtype),
            jax.ShapeDtypeStruct((B, H), inputs.dtype),
        ),
        grid=grid,
        in_specs=[
            pl.BlockSpec((tile_b, n_in_p), lambda i: (i, 0)),
            pl.BlockSpec((wslab.shape[0], H2), lambda i: (0, 0)),  # resident
            pl.BlockSpec((8, H2), lambda i: (0, 0)),               # resident
        ],
        out_specs=(
            pl.BlockSpec((tile_b, 1), lambda i: (i, 0)),
            pl.BlockSpec((tile_b, H), lambda i: (i, 0)),
        ),
        compiler_params=pltpu.CompilerParams(
            dimension_semantics=("parallel",)),
        cost_estimate=cost,
    )(x, wslab, bslab)

    return value, hidden_actor, rnn_hxs


def init_mlp_base_params(key, num_inputs, hidden_size):
    """Deterministic parameter init (shapes match nn.Linear in MLPBase)."""
    def linear(k, fan_in, fan_out):
        kw, kb = jax.random.split(k)
        bound = 1.0 / jnp.sqrt(jnp.float32(fan_in))
        w = jax.random.uniform(kw, (fan_in, fan_out), jnp.float32, -bound, bound)
        b = jax.random.uniform(kb, (1, fan_out), jnp.float32, -bound, bound)
        return w, b

    keys = jax.random.split(key, 7)
    p = {}
    p["aw1"], p["ab1"] = linear(keys[0], num_inputs, hidden_size)
    p["aw2"], p["ab2"] = linear(keys[1], hidden_size, hidden_size)
    p["aw3"], p["ab3"] = linear(keys[2], hidden_size, hidden_size)
    p["cw1"], p["cb1"] = linear(keys[3], num_inputs, hidden_size)
    p["cw2"], p["cb2"] = linear(keys[4], hidden_size, hidden_size)
    p["cw3"], p["cb3"] = linear(keys[5], hidden_size, hidden_size)
    p["clw"], p["clb"] = linear(keys[6], hidden_size, 1)
    return p


def mlp_base_reference(inputs, rnn_hxs, masks, params):
    """Pure-JAX f32 reference matching the PyTorch module."""
    del masks

    def lt(h, w, b):
        return jnp.tanh(h @ w + b)

    ha = lt(lt(lt(inputs, params["aw1"], params["ab1"]),
               params["aw2"], params["ab2"]),
            params["aw3"], params["ab3"])
    hc = lt(lt(lt(inputs, params["cw1"], params["cb1"]),
               params["cw2"], params["cb2"]),
            params["cw3"], params["cb3"])
    v = hc @ params["clw"] + params["clb"]
    return v, ha, rnn_hxs


if __name__ == "__main__":
    # Small shapes consistent with the module's forward:
    #   inputs:  [batch, num_inputs]
    #   rnn_hxs: [batch, 1]   (recurrent_hidden_state_size == 1 when not recurrent)
    #   masks:   [batch, 1]
    batch, num_inputs, hidden_size = 8, 16, 64

    key = jax.random.PRNGKey(0)
    k_x, k_h, k_p = jax.random.split(key, 3)

    inputs = jax.random.normal(k_x, (batch, num_inputs), jnp.float32)
    rnn_hxs = jax.random.normal(k_h, (batch, 1), jnp.float32)
    masks = jnp.ones((batch, 1), jnp.float32)

    params = init_mlp_base_params(k_p, num_inputs, hidden_size)
    wslab, bslab = pack_mlp_base_params(params, num_inputs, hidden_size)

    fwd = jax.jit(functools.partial(mlp_base_forward, hidden_size=hidden_size))
    value, hidden_actor, rnn_hxs_out = fwd(inputs, rnn_hxs, masks, wslab, bslab)
    jax.block_until_ready((value, hidden_actor, rnn_hxs_out))

    # shape checks
    assert value.shape == (batch, 1)
    assert hidden_actor.shape == (batch, hidden_size)
    assert rnn_hxs_out.shape == rnn_hxs.shape

    # numerical check vs. pure-f32 reference (bf16 matmul inputs => loose tol)
    v_ref, ha_ref, _ = mlp_base_reference(inputs, rnn_hxs, masks, params)
    assert jnp.allclose(value, v_ref, atol=3e-2, rtol=3e-2), "value mismatch"
    assert jnp.allclose(hidden_actor, ha_ref, atol=3e-2, rtol=3e-2), "actor mismatch"

    # TODO(synk): recurrent=True path (nn.GRU with mask-based sequence splitting)
    # is not implemented; the default MLPBase config is non-recurrent.
    print("KERNEL_OK")
</pallas_src>

<mosaic_0001>
module attributes {stable_mosaic.version = 11 : i64} {
  func.func @_mlp_base_kernel(%arg0: i32, %arg1: memref<8x16xf32, #tpu.memory_space<vmem>>, %arg2: memref<272x128xbf16, #tpu.memory_space<vmem>>, %arg3: memref<8x128xf32, #tpu.memory_space<vmem>>, %arg4: memref<8x1xf32, #tpu.memory_space<vmem>>, %arg5: memref<8x64xf32, #tpu.memory_space<vmem>>) attributes {dimension_semantics = [#tpu.dimension_semantics<parallel>], iteration_bounds = array<i64: 1>, scalar_prefetch = 0 : i64, scratch_operands = 0 : i64, tpu.core_type = #tpu.core_type<tc>, window_params = [{transform_indices = @transform_0, window_bounds = array<i64: 8, 16>}, {pipeline_mode = #tpu.pipeline_mode<synchronous>, transform_indices = @transform_1, window_bounds = array<i64: 272, 128>}, {pipeline_mode = #tpu.pipeline_mode<synchronous>, transform_indices = @transform_2, window_bounds = array<i64: 8, 128>}, {transform_indices = @transform_3, window_bounds = array<i64: 8, 1>}, {transform_indices = @transform_4, window_bounds = array<i64: 8, 64>}]} {
    %c0 = arith.constant 0 : index
    %c0_0 = arith.constant 0 : index
    %0 = vector.load %arg1[%c0, %c0_0] : memref<8x16xf32, #tpu.memory_space<vmem>>, vector<8x16xf32>
    %1 = arith.truncf %0 : vector<8x16xf32> to vector<8x16xbf16>
    %c0_1 = arith.constant 0 : index
    %c0_2 = arith.constant 0 : index
    %2 = vector.load %arg2[%c0_1, %c0_2] : memref<272x128xbf16, #tpu.memory_space<vmem>>, vector<16x128xbf16>
    %cst = arith.constant dense<0.000000e+00> : vector<8x128xf32>
    %3 = tpu.matmul %1, %2, %cst {dimension_numbers = #tpu.dot_dimension_numbers<[1], [0], [0], [1], [0, 0, 1, 1], [], []>} : vector<8x16xbf16>, vector<16x128xbf16>, vector<8x128xf32> -> vector<8x128xf32>
    %c0_3 = arith.constant 0 : index
    %c0_4 = arith.constant 0 : index
    %4 = vector.load %arg3[%c0_3, %c0_4] : memref<8x128xf32, #tpu.memory_space<vmem>>, vector<1x128xf32>
    %5 = vector.broadcast %4 : vector<1x128xf32> to vector<8x128xf32>
    %6 = arith.addf %3, %5 : vector<8x128xf32>
    %7 = math.tanh %6 : vector<8x128xf32>
    %8 = arith.truncf %7 : vector<8x128xf32> to vector<8x128xbf16>
    %c16 = arith.constant 16 : index
    %c0_5 = arith.constant 0 : index
    %9 = vector.load %arg2[%c16, %c0_5] : memref<272x128xbf16, #tpu.memory_space<vmem>>, vector<128x128xbf16>
    %cst_6 = arith.constant dense<0.000000e+00> : vector<8x128xf32>
    %10 = tpu.matmul %8, %9, %cst_6 {dimension_numbers = #tpu.dot_dimension_numbers<[1], [0], [0], [1], [0, 0, 1, 1], [], []>} : vector<8x128xbf16>, vector<128x128xbf16>, vector<8x128xf32> -> vector<8x128xf32>
    %c1 = arith.constant 1 : index
    %c0_7 = arith.constant 0 : index
    %11 = vector.load %arg3[%c1, %c0_7] : memref<8x128xf32, #tpu.memory_space<vmem>>, vector<1x128xf32>
    %12 = vector.broadcast %11 : vector<1x128xf32> to vector<8x128xf32>
    %13 = arith.addf %10, %12 : vector<8x128xf32>
    %14 = math.tanh %13 : vector<8x128xf32>
    %15 = arith.truncf %14 : vector<8x128xf32> to vector<8x128xbf16>
    %c144 = arith.constant 144 : index
    %c0_8 = arith.constant 0 : index
    %16 = vector.load %arg2[%c144, %c0_8] : memref<272x128xbf16, #tpu.memory_space<vmem>>, vector<128x128xbf16>
    %cst_9 = arith.constant dense<0.000000e+00> : vector<8x128xf32>
    %17 = tpu.matmul %15, %16, %cst_9 {dimension_numbers = #tpu.dot_dimension_numbers<[1], [0], [0], [1], [0, 0, 1, 1], [], []>} : vector<8x128xbf16>, vector<128x128xbf16>, vector<8x128xf32> -> vector<8x128xf32>
    %c2 = arith.constant 2 : index
    %c0_10 = arith.constant 0 : index
    %18 = vector.load %arg3[%c2, %c0_10] : memref<8x128xf32, #tpu.memory_space<vmem>>, vector<1x128xf32>
    %19 = vector.broadcast %18 : vector<1x128xf32> to vector<8x128xf32>
    %20 = arith.addf %17, %19 : vector<8x128xf32>
    %21 = math.tanh %20 : vector<8x128xf32>
    %c3 = arith.constant 3 : index
    %c0_11 = arith.constant 0 : index
    %22 = vector.load %arg3[%c3, %c0_11] : memref<8x128xf32, #tpu.memory_space<vmem>>, vector<1x128xf32>
    %23 = vector.broadcast %22 : vector<1x128xf32> to vector<8x128xf32>
    %24 = arith.mulf %21, %23 : vector<8x128xf32>
    %cst_12 = arith.constant dense<0.000000e+00> : vector<8xf32>
    %25 = vector.multi_reduction <add>, %24, %cst_12 [1] : vector<8x128xf32> to vector<8xf32>
    %26 = vector.shape_cast %25 : vector<8xf32> to vector<8x1xf32>
    %c4 = arith.constant 4 : index
    %c0_13 = arith.constant 0 : index
    %27 = vector.load %arg3[%c4, %c0_13] : memref<8x128xf32, #tpu.memory_space<vmem>>, vector<1x1xf32>
    %28 = vector.broadcast %27 : vector<1x1xf32> to vector<8x1xf32>
    %29 = arith.addf %26, %28 : vector<8x1xf32>
    %c0_14 = arith.constant 0 : index
    %c0_15 = arith.constant 0 : index
    %30 = vector.load %arg4[%c0_14, %c0_15] : memref<8x1xf32, #tpu.memory_space<vmem>>, vector<8x1xf32>
    tpu.vector_store %arg4[%c0_14, %c0_15], %29 {strides = array<i32>} : memref<8x1xf32, #tpu.memory_space<vmem>>, vector<8x1xf32>,
    %31 = vector.extract_strided_slice %21 {offsets = [0, 0], sizes = [8, 64], strides = [1, 1]} : vector<8x128xf32> to vector<8x64xf32>
    %c0_16 = arith.constant 0 : index
    %c0_17 = arith.constant 0 : index
    %32 = vector.load %arg5[%c0_16, %c0_17] : memref<8x64xf32, #tpu.memory_space<vmem>>, vector<8x64xf32>
    tpu.vector_store %arg5[%c0_16, %c0_17], %31 {strides = array<i32>} : memref<8x64xf32, #tpu.memory_space<vmem>>, vector<8x64xf32>,
    return
  }
  func.func @transform_0(%arg0: i32) -> (i32, i32) {
    %c0_i32 = arith.constant 0 : i32
    %c0_i32_0 = arith.constant 0 : i32
    return %arg0, %c0_i32 : i32, i32
  }
  func.func @transform_1(%arg0: i32) -> (i32, i32) {
    %c0_i32 = arith.constant 0 : i32
    %c0_i32_0 = arith.constant 0 : i32
    %c0_i32_1 = arith.constant 0 : i32
    return %c0_i32, %c0_i32_0 : i32, i32
  }
  func.func @transform_2(%arg0: i32) -> (i32, i32) {
    %c0_i32 = arith.constant 0 : i32
    %c0_i32_0 = arith.constant 0 : i32
    %c0_i32_1 = arith.constant 0 : i32
    return %c0_i32, %c0_i32_0 : i32, i32
  }
  func.func @transform_3(%arg0: i32) -> (i32, i32) {
    %c0_i32 = arith.constant 0 : i32
    %c0_i32_0 = arith.constant 0 : i32
    return %arg0, %c0_i32 : i32, i32
  }
  func.func @transform_4(%arg0: i32) -> (i32, i32) {
    %c0_i32 = arith.constant 0 : i32
    %c0_i32_0 = arith.constant 0 : i32
    return %arg0, %c0_i32 : i32, i32
  }
}

</mosaic_0001>

<bundles_post_ra>
// kernel: mlp_base_forward.1
= control target key start
LH: loop header
LB: loop body
LE: loop exit
PB: predicated region body
PF: predicated region fallthrough
CT: control target
= control target key end

     0   :  { %10 = vsyncpa [#allocation3], 0  ;;  %s652_s0 = inlined_call_operand.hbm [shape: f32[8,16], index: 0, kind: input, shape index: {}]   ;;  %s653_s1 = inlined_call_operand.hbm [shape: bf16[272,128], index: 1, kind: input, shape index: {}]   ;;  %s654_s2 = inlined_call_operand.hbm [shape: f32[8,128], index: 2, kind: input, shape index: {}]   ;;  %s655_s3 = inlined_call_operand.vmem [shape: f32[8,1], index: 3, kind: output, shape index: {0}]   ;;  %s656_s4 = inlined_call_operand.hbm [shape: f32[8,64], index: 4, kind: output, shape index: {1}]  }
   0x1   :  { %11 = vsyncpa [#allocation6], 0 }
   0x2   :  { %12 = vsyncpa [#allocation4], 0  ;;  %s581_s15 = smov [#allocation5]  }
   0x3   :  { %s28_s16 = sshll.u32 %s581_s15, 4  ;;  %s29_s16 = int_to_ptr.vmem [resolvable:$true] %s28_s16 }
   0x4   :  { %s503_s17 = scalar_lea.vmem %s29_s16, 2176  ;;  %p508_p1 = scmp.lt.s32.totalorder %s29_s16, %s29_s16 }
   0x5   :  { %p504_p0 = scmp.ne.s32.totalorder %s29_s16, %s503_s17  ;;  %p509_p2 = scmp.lt.s32.totalorder %s503_s17, %s503_s17 }
   0x7   :  { %p510_p3 = por %p509_p2, %p508_p1 }
   0x9   :  { %p511_p4 = pnand %p510_p3, %p504_p0 }
   0xb   :  { %514 = shalt.err (!%p511_p4)
}
   0xc   :  { %s582_s18 = smov 64   ;;  %s583_s19 = smov 4  }
   0xd   :  { %34 = dma.hbm_to_vmem [thread:$0]  %s653_s1, 2176, %s29_s16, [#allocation6], %s582_s18, %s582_s18, %s583_s19  }
   0xe   :  { %s584_s22 = smov [#allocation2]   ;;  %s585_s24 = smov [#allocation7]  }
   0xf   :  { %s19_s23 = sshll.u32 %s584_s22, 4  ;;  %s41_s25 = sshll.u32 %s585_s24, 4  ;;  %s20_s23 = int_to_ptr.vmem [resolvable:$true] %s19_s23  ;;  %s42_s25 = int_to_ptr.vmem [resolvable:$true] %s41_s25 }
  0x10   :  { %s523_s26 = scalar_lea.vmem %s20_s23, 128  ;;  %p528_p6 = scmp.lt.s32.totalorder %s20_s23, %s20_s23 }
  0x11   :  { %p524_p5 = scmp.ne.s32.totalorder %s20_s23, %s523_s26  ;;  %p529_p7 = scmp.lt.s32.totalorder %s523_s26, %s523_s26 }
  0x13   :  { %p530_p8 = por %p529_p7, %p528_p6 }
  0x15   :  { %p531_p9 = pnand %p530_p8, %p524_p5 }
  0x17   :  { %534 = shalt.err (!%p531_p9)
}
  0x18   :  { %22 = dma.hbm_to_vmem [thread:$0]  %s652_s0, 128, %s20_s23, [#allocation3]  }
  0x19   :  { %s543_s29 = scalar_lea.vmem %s42_s25, 128  ;;  %p548_p11 = scmp.lt.s32.totalorder %s42_s25, %s42_s25 }
  0x1a   :  { %p544_p10 = scmp.ne.s32.totalorder %s42_s25, %s543_s29  ;;  %p549_p12 = scmp.lt.s32.totalorder %s543_s29, %s543_s29 }
  0x1c   :  { %p550_p13 = por %p549_p12, %p548_p11 }
  0x1e   :  { %p551_p0 = pnand %p550_p13, %p544_p10 }
  0x20   :  { %554 = shalt.err (!%p551_p0)
}
  0x21   :  { %44 = dma.hbm_to_vmem [thread:$0]  %s654_s2, 128, %s42_s25, [#allocation6]  }
  0x22   :  { %575 = dma.done.wait [#allocation3], 128  }
  0x23   :  { %576 = vsyncadd [#allocation3], 4294967168 }
  0x24   :  { %577 = dma.done.wait [#allocation6], 2304  }
  0x25   :  { %578 = vsyncadd [#allocation6], 4294964992  ;;  %v586_v0 = vmov 0.0   ;;  %vm587_vm0 = vmmov 0   ;;  %v472_v1 = vld [vmem:[#allocation5] sm:$0xff]   ;;  %v55_v2 = vld [vmem:[#allocation2] sm:$0xff] }
  0x26   :  { %418 = vmatprep.subr.bf16.mxu0 %v586_v0  ;;  %420 = vmatprep.mubr.msk.bf16.mxu0 %vm587_vm0, %v586_v0  ;;  %v56_v3 = vpack.c.bf16 %v55_v2, %v55_v2  ;;  %vm70_vm1 = vcmask 130048   ;;  %v473_v4 = vld [vmem:[#allocation5 + $0x40] sm:$0xff]   ;;  %v474_v5 = vld [vmem:[#allocation5 + $0x38] sm:$0xff]   ;;  %v475_v6 = vld [vmem:[#allocation5 + $0x30] sm:$0xff]   ;;  %vm353_vm2 = vcmask 523264   ;;  %s588_s0 = smov [#allocation8]  }
  0x27   :  { %424 = vmatprep.subr.bf16.mxu1 %v586_v0  ;;  %440 = vmatprep.mubr.msk.bf16.mxu1 %vm587_vm0, %v586_v0  ;;  %v476_v7 = vld [vmem:[#allocation5 + $0x28] sm:$0xff]   ;;  %v477_v8 = vld [vmem:[#allocation5 + $0x20] sm:$0xff]   ;;  %v478_v9 = vld [vmem:[#allocation5 + $0x18] sm:$0xff]   ;;  %s363_s2 = sshll.u32 %s588_s0, 4  ;;  %s364_s2 = int_to_ptr.vmem [resolvable:$true] %s363_s2 }
  0x28   :  { %419 = vmatpush3.bf16.msra.mxu0 %v472_v1  ;;  %425 = vmatpush3.bf16.msra.mxu1 %v473_v4  ;;  %v479_v10 = vld [vmem:[#allocation5 + $0x10] sm:$0xff]   ;;  %v480_v11 = vld [vmem:[#allocation5 + $0x8] sm:$0xff]   ;;  %v481_v12 = vld [vmem:[#allocation5 + $0x80] sm:$0xff]   ;;  %s555_s5 = scalar_lea.vmem %s364_s2, 128  ;;  %p560_p2 = scmp.lt.s32.totalorder %s364_s2, %s364_s2 }
  0x29   :  { %444 = vmatprep.subr.bf16.mxu0 %v586_v0  ;;  %426 = vmatprep.subr.bf16.mxu1 %v586_v0  ;;  %v482_v13 = vld [vmem:[#allocation5 + $0x78] sm:$0xff]   ;;  %v483_v14 = vld [vmem:[#allocation5 + $0x70] sm:$0xff]   ;;  %v375_v15 = vld [vmem:[#allocation7] ss:$0 sm:$0xff]  ;;  %p556_p1 = scmp.ne.s32.totalorder %s364_s2, %s555_s5  ;;  %p561_p3 = scmp.lt.s32.totalorder %s555_s5, %s555_s5 }
  0x2a   :  { %v484_v23 = vld [vmem:[#allocation5 + $0x68] sm:$0xff]   ;;  %v485_v24 = vld [vmem:[#allocation5 + $0x60] sm:$0xff]   ;;  %v486_v25 = vld [vmem:[#allocation5 + $0x58] sm:$0xff]  }
  0x2b   :  { %421 = vmatmul.mubr.msk.bf16.vlgmr.msra.gmra.mxu0 %vm70_vm1, %v56_v3  ;;  %v487_v26 = vld [vmem:[#allocation5 + $0x50] sm:$0xff]   ;;  %v488_v27 = vld [vmem:[#allocation5 + $0x48] sm:$0xff]   ;;  %p562_p4 = por %p561_p3, %p560_p2 }
  0x2c   :  { %460 = vmatprep.mubr.msk.bf16.mxu0 %vm587_vm0, %v586_v0  ;;  %427 = vmatpush3.bf16.msra.mxu1 %v474_v5  ;;  %v378_v28 = vld [vmem:[#allocation7 + $0x1] ss:$0 sm:$0xff]  ;;  %v387_v36 = vld [vmem:[#allocation7 + $0x2] ss:$0 sm:$0xff]  ;;  %v396_v42 = vld [vmem:[#allocation7 + $0x3] ss:$0 sm:$0xff] }
  0x2d   :  { %428 = vmatprep.subr.bf16.mxu1 %v586_v0  ;;  %445 = vmatpush3.bf16.msra.mxu0 %v481_v12  ;;  %p563_p5 = pnand %p562_p4, %p556_p1 }
  0x2e   :  { %446 = vmatprep.subr.bf16.mxu0 %v586_v0 }
  0x30   :  { %429 = vmatpush3.bf16.msra.mxu1 %v475_v6 }
  0x31   :  { %430 = vmatprep.subr.bf16.mxu1 %v586_v0  ;;  %447 = vmatpush3.bf16.msra.mxu0 %v482_v13 }
  0x32   :  { %448 = vmatprep.subr.bf16.mxu0 %v586_v0 }
  0x34   :  { %431 = vmatpush3.bf16.msra.mxu1 %v476_v7 }
  0x35   :  { %432 = vmatprep.subr.bf16.mxu1 %v586_v0  ;;  %449 = vmatpush3.bf16.msra.mxu0 %v483_v14 }
  0x36   :  { %450 = vmatprep.subr.bf16.mxu0 %v586_v0 }
  0x38   :  { %433 = vmatpush3.bf16.msra.mxu1 %v477_v8 }
  0x39   :  { %434 = vmatprep.subr.bf16.mxu1 %v586_v0  ;;  %451 = vmatpush3.bf16.msra.mxu0 %v484_v23 }
  0x3a   :  { %452 = vmatprep.subr.bf16.mxu0 %v586_v0 }
  0x3c   :  { %435 = vmatpush3.bf16.msra.mxu1 %v478_v9 }
  0x3d   :  { %436 = vmatprep.subr.bf16.mxu1 %v586_v0  ;;  %453 = vmatpush3.bf16.msra.mxu0 %v485_v24 }
  0x3e   :  { %454 = vmatprep.subr.bf16.mxu0 %v586_v0 }
  0x40   :  { %437 = vmatpush3.bf16.msra.mxu1 %v479_v10 }
  0x41   :  { %438 = vmatprep.subr.bf16.mxu1 %v586_v0  ;;  %455 = vmatpush3.bf16.msra.mxu0 %v486_v25 }
  0x42   :  { %456 = vmatprep.subr.bf16.mxu0 %v586_v0 }
  0x44   :  { %439 = vmatpush3.bf16.msra.mxu1 %v480_v11 }
  0x45   :  { %457 = vmatpush3.bf16.msra.mxu0 %v487_v26 }
  0x46   :  { %458 = vmatprep.subr.bf16.mxu0 %v586_v0 }
  0x49   :  { %459 = vmatpush3.bf16.msra.mxu0 %v488_v27 }
  0xeb   :  { %v108_v16 = vpop.f32.mrf.mxu0 }
  0xec   :  { %v109_v17 = vadd.f32 %v375_v15, %v108_v16 }
  0xed   :  { %v422_v18 = vpop.f32.mrf.mxu0 }
  0xee   :  { %489 = vtanh.f32 %v109_v17 }
  0xef   :  { %v111_v19 = vpop.f32.mrf.mxu0 }
  0xf1   :  { %v423_v20 = vpop.f32.mrf.mxu0 }
  0xfb   :  { %v490_v21 = vpop.eup %489 }
  0xfc   :  { %v115_v22 = vpack.c.bf16 %v490_v21, %v490_v21 }
  0xfe   :  { %441 = vmatmul.mubr.bf16.vlgmr.msra.gmra.mxu1 %v115_v22 }
 0x1be   :  { %v219_v29 = vpop.f32.mrf.mxu1 }
 0x1bf   :  { %v220_v30 = vadd.f32 %v378_v28, %v219_v29 }
 0x1c0   :  { %v442_v31 = vpop.f32.mrf.mxu1 }
 0x1c1   :  { %491 = vtanh.f32 %v220_v30 }
 0x1c2   :  { %v222_v32 = vpop.f32.mrf.mxu1 }
 0x1c4   :  { %v443_v33 = vpop.f32.mrf.mxu1 }
 0x1ce   :  { %v492_v34 = vpop.eup %491 }
 0x1cf   :  { %v226_v35 = vpack.c.bf16 %v492_v34, %v492_v34 }
 0x1d1   :  { %461 = vmatmul.mubr.bf16.vlgmr.msra.gmra.mxu0 %v226_v35 }
 0x291   :  { %v330_v37 = vpop.f32.mrf.mxu0 }
 0x292   :  { %v331_v38 = vadd.f32 %v387_v36, %v330_v37 }
 0x293   :  { %v462_v39 = vpop.f32.mrf.mxu0 }
 0x294   :  { %493 = vtanh.f32 %v331_v38 }
 0x295   :  { %v333_v40 = vpop.f32.mrf.mxu0 }
 0x297   :  { %v463_v41 = vpop.f32.mrf.mxu0 }
 0x2a1   :  { %v494_v43 = vpop.eup %493 }
 0x2a2   :  { %v342_v44 = vmul.f32 %v494_v43, %v396_v42  ;;  %354 = vst.msk [vmem:[#allocation8] sm:$0xff] %vm353_vm2, %v494_v43 }
 0x2a4   :  { %343 = vadd.xlane.f32.xlu0 %v342_v44 }
 0x2a5   :  { %566 = shalt.err (!%p563_p5)
}
 0x2a6   :  { %366 = dma.vmem_to_hbm [thread:$0]  %s364_s2, 128, %s656_s4, [#allocation4]   ;;  %v397_v45 = vld [vmem:[#allocation7 + $0x4] ss:$0 sm:$0xff]  ;;  %vm351_vm3 = vcmask 7168  }
 0x32d   :  { %v344_v46 = vpop.xlane.xlu0 %343 }
 0x32e   :  { %v350_v47 = vadd.f32 %v397_v45, %v344_v46 }
 0x330   :  { %352 = vst.msk [vmem:[%s655_s3] sm:$0xff] %vm351_vm3, %v350_v47 }
 0x331   :  { %579 = dma.done.wait [#allocation4], 128  }
 0x332   :  { %580 = vsyncadd [#allocation4], 4294967168 }
 0x333   :  { %372 = vsyncpa [#allocation3], 1 }
 0x334   :  { %373 = vsyncpa [#allocation6], 1 }
 0x335   :  { %374 = vsyncpa [#allocation4], 1 }

</bundles_post_ra>
